<compile_context>
chip_gen: v7x
topology: tpu7x:2x2x1
jax: 0.10.0
libtpu: 0.0.40
codegen_flags: <defaults>
</compile_context>

<pallas_src>
import functools

import jax
import jax.numpy as jnp
from jax.experimental import pallas as pl
from jax.experimental.pallas import tpu as pltpu

# ---------------------------------------------------------------------------
# Tiling configuration
# ---------------------------------------------------------------------------
_LANE_CANDIDATES = (512, 256, 128)       # lane-dense widths (multiples of 128)
_ANN_BLOCK_BYTES = 2 * 1024 * 1024       # per-block bytes for 2-stream kernels
_SNN_BLOCK_BYTES = 1 * 1024 * 1024       # SNN moves 4 full streams per step
_FUSE_MAX_BYTES = 8 * 1024 * 1024        # 'ann' single-block fused path limit
_VMEM_LIMIT_TILED = 32 * 1024 * 1024
_VMEM_LIMIT_FUSED = 40 * 1024 * 1024


def _cdiv(a, b):
    return -(-a // b)


def _layout(n):
    """Choose (lane, rows, needs_pad) for the lane-dense 2D view of n elems."""
    for lane in _LANE_CANDIDATES:
        if n % lane == 0:
            return lane, n // lane, False
    lane = _LANE_CANDIDATES[0]
    return lane, _cdiv(n, lane), True


def _block_rows(rows, lane, target_bytes):
    """Largest row-block (<= target_bytes) that is a multiple of 8; if the
    whole array fits, use the full row extent (always a legal block dim)."""
    cap = max(8, (target_bytes // (lane * 4)) // 8 * 8)
    if rows <= cap:
        return rows
    return cap


def _to_2d(x, lane, rows, pad):
    flat = x.reshape(-1).astype(jnp.float32)
    if pad:   # unaligned sizes only (n % 128 != 0): one small pad copy
        flat = jnp.pad(flat, (0, rows * lane - flat.shape[0]))
    return flat.reshape(rows, lane)


def _from_2d(y2d, shape, n, pad):
    if pad:
        return y2d.reshape(-1)[:n].reshape(shape)
    return y2d.reshape(shape)


def _smem_scalar(v):
    return jnp.asarray(v, jnp.float32).reshape(1)


def _ann_scalars(thre, c, n_valid):
    return jnp.stack([jnp.asarray(thre, jnp.float32),
                      jnp.asarray(c, jnp.float32),
                      jnp.float32(1.0 / n_valid)])


def _valid_mask(block_i, br, lane, n_valid):
    """In-bounds mask for row-block `block_i` of the (rows, lane) view; guards
    both the padded tail lanes and partial last blocks."""
    r = jax.lax.broadcasted_iota(jnp.int32, (br, lane), 0) + block_i * br
    c = jax.lax.broadcasted_iota(jnp.int32, (br, lane), 1)
    return (r * lane + c) < n_valid


# ---------------------------------------------------------------------------
# Kernels
# ---------------------------------------------------------------------------
def _ann_fused_kernel(scal_ref, x_ref, y_ref, thre_ref, sq_ref,
                      *, n_valid, exact):
    """Single-block fused optimize(): threshold update + clamp + fro-delta
    with x resident in VMEM (x is read from HBM exactly once)."""
    t0 = scal_ref[0]
    c = scal_ref[1]
    inv_n = scal_ref[2]
    x = x_ref[...]
    excess = jnp.maximum(x - t0, 0.0)
    if not exact:
        m = _valid_mask(0, x.shape[0], x.shape[1], n_valid)
        excess = jnp.where(m, excess, 0.0)
    s = jnp.sum(excess, keepdims=True)              # (1, 1)
    new_t = t0 + c * 2.0 * (s * inv_n)              # (1, 1)
    y = jnp.minimum(jnp.maximum(x, 0.0), new_t)     # broadcast (1,1) -> (R,L)
    y_ref[...] = y
    d = y - x
    if not exact:
        d = jnp.where(m, d, 0.0)
    thre_ref[...] = new_t
    sq_ref[...] = jnp.sum(d * d, keepdims=True)


def _ann_twopass_kernel(scal_ref, x_ref, y_ref, thre_ref, sq_ref, acc_ref,
                        *, n_valid, exact):
    """Fused two-pass optimize() for large activations, grid = (2, nblk).
    Pass p=0 accumulates the positive excess; its last step writes the new
    threshold into the resident (1,1) thre output block.  Pass p=1 re-streams
    x, clamps against that threshold and accumulates the squared delta."""
    p = pl.program_id(0)
    i = pl.program_id(1)
    nblk = pl.num_programs(1)
    br, lane = acc_ref.shape

    @pl.when(jnp.logical_and(p == 0, i == 0))
    def _():
        acc_ref[...] = jnp.zeros_like(acc_ref)

    x = x_ref[...]
    mask = None if exact else _valid_mask(i, br, lane, n_valid)

    @pl.when(p == 0)
    def _():
        excess = jnp.maximum(x - scal_ref[0], 0.0)
        if mask is not None:
            excess = jnp.where(mask, excess, 0.0)
        acc_ref[...] += excess

    @pl.when(jnp.logical_and(p == 0, i == nblk - 1))
    def _():
        s = jnp.sum(acc_ref[...], keepdims=True)                     # (1, 1)
        thre_ref[...] = scal_ref[0] + scal_ref[1] * 2.0 * (s * scal_ref[2])
        acc_ref[...] = jnp.zeros_like(acc_ref)   # reuse as delta accumulator

    @pl.when(p == 1)
    def _():
        t = thre_ref[...]                   # resident (1,1) output block
        y = jnp.minimum(jnp.maximum(x, 0.0), t)
        y_ref[...] = y
        d = y - x
        if mask is not None:
            d = jnp.where(mask, d, 0.0)
        acc_ref[...] += d * d

    @pl.when(jnp.logical_and(p == 1, i == nblk - 1))
    def _():
        sq_ref[...] = jnp.sum(acc_ref[...], keepdims=True)


def _clip_kernel(thre_ref, x_ref, y_ref):
    t = thre_ref[0]
    y_ref[...] = jnp.minimum(jnp.maximum(x_ref[...], 0.0), t)


def _snn_kernel(thre_ref, x_ref, mem_ref, out_ref, newmem_ref, cnt_ref,
                *, n_valid, exact):
    """mem += x; spike = (mem - thre) > 0; out = spike * thre; mem -= out.
    Each block writes its own spike-count partial, so there is no carried
    accumulator and the grid axis can be 'parallel' (dual-TC on v7x)."""
    i = pl.program_id(0)
    t = thre_ref[0]
    x = x_ref[...]
    br, lane = x.shape
    mem = mem_ref[...] + x
    spk = (mem - t) > 0.0
    out = jnp.where(spk, t, 0.0)
    out_ref[...] = out
    newmem_ref[...] = mem - out
    spk_f = spk.astype(jnp.float32)
    if not exact:
        spk_f = jnp.where(_valid_mask(i, br, lane, n_valid), spk_f, 0.0)
    cnt_ref[...] = jnp.full((1, 8, 128), jnp.sum(spk_f), jnp.float32)


# ---------------------------------------------------------------------------
# pallas_call wrappers (operate on the (rows, lane) 2D view)
# ---------------------------------------------------------------------------
def _ann_fused_call(x2d, thre, c, n_valid, pad):
    R, L = x2d.shape
    kernel = functools.partial(_ann_fused_kernel, n_valid=n_valid,
                               exact=not pad)
    return pl.pallas_call(
        kernel,
        out_shape=(jax.ShapeDtypeStruct((R, L), jnp.float32),
                   jax.ShapeDtypeStruct((1, 1), jnp.float32),
                   jax.ShapeDtypeStruct((1, 1), jnp.float32)),
        grid=(1,),
        in_specs=[pl.BlockSpec(memory_space=pltpu.MemorySpace.SMEM),
                  pl.BlockSpec((R, L), lambda i: (0, 0))],
        out_specs=[pl.BlockSpec((R, L), lambda i: (0, 0)),
                   pl.BlockSpec((1, 1), lambda i: (0, 0)),
                   pl.BlockSpec((1, 1), lambda i: (0, 0))],
        compiler_params=pltpu.CompilerParams(
            dimension_semantics=("arbitrary",),
            vmem_limit_bytes=_VMEM_LIMIT_FUSED),
    )(_ann_scalars(thre, c, n_valid), x2d)


def _ann_twopass_call(x2d, thre, c, n_valid, pad):
    R, L = x2d.shape
    br = _block_rows(R, L, _ANN_BLOCK_BYTES)
    nblk = _cdiv(R, br)
    exact = (not pad) and (R % br == 0)
    kernel = functools.partial(_ann_twopass_kernel, n_valid=n_valid,
                               exact=exact)
    return pl.pallas_call(
        kernel,
        out_shape=(jax.ShapeDtypeStruct((R, L), jnp.float32),
                   jax.ShapeDtypeStruct((1, 1), jnp.float32),
                   jax.ShapeDtypeStruct((1, 1), jnp.float32)),
        grid=(2, nblk),
        in_specs=[pl.BlockSpec(memory_space=pltpu.MemorySpace.SMEM),
                  pl.BlockSpec((br, L), lambda p, i: (i, 0))],
        out_specs=[
            # p*i keeps y's block index constant during pass 0, so no garbage
            # write-back happens before pass 1 fills the block.
            pl.BlockSpec((br, L), lambda p, i: (p * i, 0)),
            pl.BlockSpec((1, 1), lambda p, i: (0, 0)),
            pl.BlockSpec((1, 1), lambda p, i: (0, 0)),
        ],
        scratch_shapes=[pltpu.VMEM((br, L), jnp.float32)],
        compiler_params=pltpu.CompilerParams(
            dimension_semantics=("arbitrary", "arbitrary"),
            vmem_limit_bytes=_VMEM_LIMIT_TILED),
    )(_ann_scalars(thre, c, n_valid), x2d)


def _clip_call(x2d, thre):
    R, L = x2d.shape
    br = _block_rows(R, L, _ANN_BLOCK_BYTES)
    nblk = _cdiv(R, br)
    return pl.pallas_call(
        _clip_kernel,
        out_shape=jax.ShapeDtypeStruct((R, L), jnp.float32),
        grid=(nblk,),
        in_specs=[pl.BlockSpec(memory_space=pltpu.MemorySpace.SMEM),
                  pl.BlockSpec((br, L), lambda i: (i, 0))],
        out_specs=pl.BlockSpec((br, L), lambda i: (i, 0)),
        compiler_params=pltpu.CompilerParams(
            dimension_semantics=("parallel",),
            vmem_limit_bytes=_VMEM_LIMIT_TILED),
    )(_smem_scalar(thre), x2d)


def _snn_call(x2d, mem2d, thre, n_valid, pad):
    R, L = x2d.shape
    br = _block_rows(R, L, _SNN_BLOCK_BYTES)
    nblk = _cdiv(R, br)
    exact = (not pad) and (R % br == 0)
    kernel = functools.partial(_snn_kernel, n_valid=n_valid, exact=exact)
    out, new_mem, cnt = pl.pallas_call(
        kernel,
        out_shape=(jax.ShapeDtypeStruct((R, L), jnp.float32),
                   jax.ShapeDtypeStruct((R, L), jnp.float32),
                   jax.ShapeDtypeStruct((nblk, 8, 128), jnp.float32)),
        grid=(nblk,),
        in_specs=[pl.BlockSpec(memory_space=pltpu.MemorySpace.SMEM),
                  pl.BlockSpec((br, L), lambda i: (i, 0)),
                  pl.BlockSpec((br, L), lambda i: (i, 0))],
        out_specs=[pl.BlockSpec((br, L), lambda i: (i, 0)),
                   pl.BlockSpec((br, L), lambda i: (i, 0)),
                   pl.BlockSpec((1, 8, 128), lambda i: (i, 0, 0))],
        # membrane state (input 2) is updated in place into new_mem (output 1)
        input_output_aliases={2: 1},
        compiler_params=pltpu.CompilerParams(
            dimension_semantics=("parallel",),
            vmem_limit_bytes=_VMEM_LIMIT_TILED),
    )(_smem_scalar(thre), x2d, mem2d)
    return out, new_mem, jnp.sum(cnt[:, 0, 0])


# ---------------------------------------------------------------------------
# Jitted forward paths (single XLA dispatch each)
# ---------------------------------------------------------------------------
@jax.jit
def _ann_forward(x, thre, c):
    shape, n = x.shape, x.size
    lane, rows, pad = _layout(n)
    x2d = _to_2d(x, lane, rows, pad)
    if rows * lane * 4 <= _FUSE_MAX_BYTES:
        y2d, new_thre, sq = _ann_fused_call(x2d, thre, c, n, pad)
    else:
        y2d, new_thre, sq = _ann_twopass_call(x2d, thre, c, n, pad)
    y = _from_2d(y2d, shape, n, pad)
    return y, new_thre[0, 0], jnp.sqrt(sq[0, 0])


@jax.jit
def _clip_forward(x, thre):
    shape, n = x.shape, x.size
    lane, rows, pad = _layout(n)
    x2d = _to_2d(x, lane, rows, pad)
    y2d = _clip_call(x2d, thre)
    return _from_2d(y2d, shape, n, pad)


@functools.partial(jax.jit, donate_argnums=(1,))
def _snn_forward(x, mem2d, thre):
    shape, n = x.shape, x.size
    lane, rows, pad = _layout(n)
    x2d = _to_2d(x, lane, rows, pad)
    out2d, new_mem, cnt = _snn_call(x2d, mem2d, thre, n, pad)
    return _from_2d(out2d, shape, n, pad), new_mem, cnt


# ---------------------------------------------------------------------------
# Module wrapper (mirrors the PyTorch SpikingNeuron, state held in Python)
# ---------------------------------------------------------------------------
class SpikingNeuron:
    def __init__(self, c, mode='ann'):
        self.thre = jnp.float32(0.0)            # buffer 'thre'
        self.c = jnp.asarray(c, jnp.float32)    # buffer 'c'
        self.macs = jnp.float32(0.0)            # buffer 'macs'
        self.mode = mode
        self.T = 0
        self.mem = None
        self.delta = 0.0
        self.op = jnp.float32(0.0)

    def __call__(self, x):
        return self.forward(x)

    def forward(self, x):
        if self.mode == 'snn':
            n = x.size
            lane, rows, _ = _layout(n)
            if self.T == 0:
                self.mem = jnp.full((rows, lane), 0.5 * self.thre, jnp.float32)
            elif self.mem is None or self.mem.shape != (rows, lane):
                raise ValueError("snn mode: activation shape changed between "
                                 "timesteps; call reset() first")
            out, new_mem, cnt = _snn_forward(x, self.mem, self.thre)
            self.mem = new_mem
            self.op = self.op + (cnt / n) * self.macs
            self.T += 1
            return out

        if self.mode == 'clip':
            return _clip_forward(x, self.thre)

        if self.mode == 'robust_norm':
            # TODO(synk): torch.quantile(0.99, interpolation='nearest') has no
            # clean Pallas equivalent; robust_norm mode not implemented.
            raise NotImplementedError("robust_norm mode not implemented")

        # default: 'ann' -> optimize()
        y, new_thre, delta = _ann_forward(x, self.thre, self.c)
        self.thre = new_thre
        self.delta = delta
        return y

    def reset(self):
        self.mem = None
        self.T = 0
        self.op = jnp.float32(0.0)


# ---------------------------------------------------------------------------
# Demo / correctness check
# ---------------------------------------------------------------------------
if __name__ == "__main__":
    key = jax.random.PRNGKey(0)
    k1, k2, k3 = jax.random.split(key, 3)

    # --- 'ann' mode, small aligned shape (fused single-block path) ---
    x = jax.random.normal(k1, (2, 4, 16, 16), dtype=jnp.float32)   # NCHW
    n = x.size
    c_val = 0.1
    neuron = SpikingNeuron(c=c_val, mode='ann')
    y = jax.block_until_ready(neuron(x))
    mean_excess = jnp.mean(jnp.maximum(x - 0.0, 0.0))
    thre_ref = 0.0 + c_val * 2.0 * mean_excess
    y_ref = jnp.clip(x, 0.0, thre_ref)
    delta_ref = jnp.sqrt(jnp.sum((y_ref - x) ** 2))
    assert jnp.allclose(y, y_ref, rtol=1e-5, atol=1e-6)
    assert jnp.allclose(neuron.thre, thre_ref, rtol=1e-5, atol=1e-6)
    assert jnp.allclose(neuron.delta, delta_ref, rtol=1e-4, atol=1e-5)

    # --- 'ann' mode, unaligned shape (exercises in-kernel tail masking) ---
    xo = jax.random.normal(k2, (2, 3, 15, 15), dtype=jnp.float32)  # n = 1350
    no = SpikingNeuron(c=0.2, mode='ann')
    yo = jax.block_until_ready(no(xo))
    thre_o = 0.2 * 2.0 * jnp.mean(jnp.maximum(xo, 0.0))
    yo_ref = jnp.clip(xo, 0.0, thre_o)
    assert yo.shape == xo.shape
    assert jnp.allclose(yo, yo_ref, rtol=1e-5, atol=1e-6)
    assert jnp.allclose(no.thre, thre_o, rtol=1e-5, atol=1e-6)
    assert jnp.allclose(no.delta, jnp.sqrt(jnp.sum((yo_ref - xo) ** 2)),
                        rtol=1e-4, atol=1e-5)

    # --- 'clip' mode (aligned + unaligned) ---
    clip_mod = SpikingNeuron(c=c_val, mode='clip')
    clip_mod.thre = jnp.float32(0.7)
    yc = jax.block_until_ready(clip_mod(x))
    assert jnp.allclose(yc, jnp.clip(x, 0.0, 0.7), rtol=1e-6, atol=1e-6)
    yco = jax.block_until_ready(clip_mod(xo))
    assert jnp.allclose(yco, jnp.clip(xo, 0.0, 0.7), rtol=1e-6, atol=1e-6)

    # --- 'snn' mode (two timesteps: mem carry, spike output, op counter) ---
    snn = SpikingNeuron(c=c_val, mode='snn')
    snn.thre = jnp.float32(0.5)
    snn.macs = jnp.float32(1000.0)
    s1 = jax.block_until_ready(snn(x))
    s2 = jax.block_until_ready(snn(x))
    mem = 0.5 * 0.5 + x
    spk1 = (mem - 0.5) > 0
    o1 = jnp.where(spk1, 0.5, 0.0)
    mem = mem - o1 + x
    spk2 = (mem - 0.5) > 0
    o2 = jnp.where(spk2, 0.5, 0.0)
    assert jnp.allclose(s1, o1, atol=1e-6)
    assert jnp.allclose(s2, o2, atol=1e-6)
    op_ref = (jnp.sum(spk1) / n) * 1000.0 + (jnp.sum(spk2) / n) * 1000.0
    assert jnp.allclose(snn.op, op_ref, rtol=1e-5)

    # --- larger activation: exercises the tiled two-pass ann + tiled snn ---
    xb = jax.random.normal(k3, (4, 64, 128, 128), dtype=jnp.float32)  # 16 MiB
    nb = SpikingNeuron(c=0.05, mode='ann')
    yb = jax.block_until_ready(nb(xb))
    mexb = jnp.mean(jnp.maximum(xb, 0.0))
    thre_b = 0.05 * 2.0 * mexb
    yb_ref = jnp.clip(xb, 0.0, thre_b)
    assert jnp.allclose(yb, yb_ref, rtol=1e-4, atol=1e-5)
    assert jnp.allclose(nb.thre, thre_b, rtol=1e-4, atol=1e-6)
    assert jnp.allclose(nb.delta, jnp.sqrt(jnp.sum((yb_ref - xb) ** 2)),
                        rtol=1e-3, atol=1e-3)

    snn_b = SpikingNeuron(c=0.0, mode='snn')
    snn_b.thre = jnp.float32(0.3)
    snn_b.macs = jnp.float32(1.0)
    ob = jax.block_until_ready(snn_b(xb))
    ob_ref = jnp.where((0.5 * 0.3 + xb - 0.3) > 0, 0.3, 0.0)
    assert jnp.allclose(ob, ob_ref, atol=1e-6)
    op_b_ref = jnp.sum((0.5 * 0.3 + xb - 0.3) > 0) / xb.size * 1.0
    assert jnp.allclose(snn_b.op, op_b_ref, rtol=1e-4)

    print("KERNEL_OK")
</pallas_src>

<mosaic_0001>
module attributes {stable_mosaic.version = 11 : i64} {
  func.func @_ann_fused_kernel(%arg0: i32, %arg1: memref<3xf32, #tpu.memory_space<smem>>, %arg2: memref<4x512xf32, #tpu.memory_space<vmem>>, %arg3: memref<4x512xf32, #tpu.memory_space<vmem>>, %arg4: memref<1x1xf32, #tpu.memory_space<vmem>>, %arg5: memref<1x1xf32, #tpu.memory_space<vmem>>) attributes {dimension_semantics = [#tpu.dimension_semantics<arbitrary>], iteration_bounds = array<i64: 1>, scalar_prefetch = 0 : i64, scratch_operands = 0 : i64, tpu.core_type = #tpu.core_type<tc>, window_params = [{transform_indices = @transform_0, window_bounds = array<i64: 3>}, {pipeline_mode = #tpu.pipeline_mode<synchronous>, transform_indices = @transform_1, window_bounds = array<i64: 4, 512>}, {pipeline_mode = #tpu.pipeline_mode<synchronous>, transform_indices = @transform_2, window_bounds = array<i64: 4, 512>}, {pipeline_mode = #tpu.pipeline_mode<synchronous>, transform_indices = @transform_3, window_bounds = array<i64: 1, 1>}, {pipeline_mode = #tpu.pipeline_mode<synchronous>, transform_indices = @transform_4, window_bounds = array<i64: 1, 1>}]} {
    %c0 = arith.constant 0 : index
    %0 = memref.load %arg1[%c0] : memref<3xf32, #tpu.memory_space<smem>>
    %c1 = arith.constant 1 : index
    %1 = memref.load %arg1[%c1] : memref<3xf32, #tpu.memory_space<smem>>
    %c2 = arith.constant 2 : index
    %2 = memref.load %arg1[%c2] : memref<3xf32, #tpu.memory_space<smem>>
    %c0_0 = arith.constant 0 : index
    %c0_1 = arith.constant 0 : index
    %3 = vector.load %arg2[%c0_0, %c0_1] : memref<4x512xf32, #tpu.memory_space<vmem>>, vector<4x512xf32>
    %4 = vector.broadcast %0 : f32 to vector<4x512xf32>
    %5 = arith.subf %3, %4 : vector<4x512xf32>
    %cst = arith.constant 0.000000e+00 : f32
    %6 = vector.broadcast %cst : f32 to vector<4x512xf32>
    %7 = arith.maximumf %5, %6 : vector<4x512xf32>
    %8 = vector.shape_cast %7 : vector<4x512xf32> to vector<1x4x512xf32>
    %cst_2 = arith.constant dense<0.000000e+00> : vector<1xf32>
    %9 = vector.multi_reduction <add>, %8, %cst_2 [1, 2] : vector<1x4x512xf32> to vector<1xf32>
    %10 = vector.shape_cast %9 : vector<1xf32> to vector<1x1x1xf32>
    %11 = vector.extract %10[0, 0, 0] : f32 from vector<1x1x1xf32>
    %12 = vector.broadcast %11 : f32 to vector<1x1xf32>
    %cst_3 = arith.constant 2.000000e+00 : f32
    %13 = arith.mulf %1, %cst_3 : f32
    %14 = vector.broadcast %2 : f32 to vector<1x1xf32>
    %15 = arith.mulf %12, %14 : vector<1x1xf32>
    %16 = vector.broadcast %13 : f32 to vector<1x1xf32>
    %17 = arith.mulf %16, %15 : vector<1x1xf32>
    %18 = vector.broadcast %0 : f32 to vector<1x1xf32>
    %19 = arith.addf %18, %17 : vector<1x1xf32>
    %cst_4 = arith.constant 0.000000e+00 : f32
    %20 = vector.broadcast %cst_4 : f32 to vector<4x512xf32>
    %21 = arith.maximumf %3, %20 : vector<4x512xf32>
    %22 = vector.broadcast %19 : vector<1x1xf32> to vector<4x512xf32>
    %23 = arith.minimumf %21, %22 : vector<4x512xf32>
    %c0_5 = arith.constant 0 : index
    %c0_6 = arith.constant 0 : index
    %24 = vector.load %arg3[%c0_5, %c0_6] : memref<4x512xf32, #tpu.memory_space<vmem>>, vector<4x512xf32>
    tpu.vector_store %arg3[%c0_5, %c0_6], %23 {strides = array<i32>} : memref<4x512xf32, #tpu.memory_space<vmem>>, vector<4x512xf32>,
    %25 = arith.subf %23, %3 : vector<4x512xf32>
    %c0_7 = arith.constant 0 : index
    %c0_8 = arith.constant 0 : index
    %26 = vector.load %arg4[%c0_7, %c0_8] : memref<1x1xf32, #tpu.memory_space<vmem>>, vector<1x1xf32>
    tpu.vector_store %arg4[%c0_7, %c0_8], %19 {strides = array<i32>} : memref<1x1xf32, #tpu.memory_space<vmem>>, vector<1x1xf32>,
    %27 = arith.mulf %25, %25 : vector<4x512xf32>
    %28 = vector.shape_cast %27 : vector<4x512xf32> to vector<1x4x512xf32>
    %cst_9 = arith.constant dense<0.000000e+00> : vector<1xf32>
    %29 = vector.multi_reduction <add>, %28, %cst_9 [1, 2] : vector<1x4x512xf32> to vector<1xf32>
    %30 = vector.shape_cast %29 : vector<1xf32> to vector<1x1x1xf32>
    %31 = vector.extract %30[0, 0, 0] : f32 from vector<1x1x1xf32>
    %32 = vector.broadcast %31 : f32 to vector<1x1xf32>
    %c0_10 = arith.constant 0 : index
    %c0_11 = arith.constant 0 : index
    %33 = vector.load %arg5[%c0_10, %c0_11] : memref<1x1xf32, #tpu.memory_space<vmem>>, vector<1x1xf32>
    tpu.vector_store %arg5[%c0_10, %c0_11], %32 {strides = array<i32>} : memref<1x1xf32, #tpu.memory_space<vmem>>, vector<1x1xf32>,
    return
  }
  func.func @transform_0(%arg0: i32) -> i32 {
    %c0_i32 = arith.constant 0 : i32
    %c0_i32_0 = arith.constant 0 : i32
    return %c0_i32 : i32
  }
  func.func @transform_1(%arg0: i32) -> (i32, i32) {
    %c0_i32 = arith.constant 0 : i32
    %c0_i32_0 = arith.constant 0 : i32
    %c0_i32_1 = arith.constant 0 : i32
    return %c0_i32, %c0_i32_0 : i32, i32
  }
  func.func @transform_2(%arg0: i32) -> (i32, i32) {
    %c0_i32 = arith.constant 0 : i32
    %c0_i32_0 = arith.constant 0 : i32
    %c0_i32_1 = arith.constant 0 : i32
    return %c0_i32, %c0_i32_0 : i32, i32
  }
  func.func @transform_3(%arg0: i32) -> (i32, i32) {
    %c0_i32 = arith.constant 0 : i32
    %c0_i32_0 = arith.constant 0 : i32
    %c0_i32_1 = arith.constant 0 : i32
    return %c0_i32, %c0_i32_0 : i32, i32
  }
  func.func @transform_4(%arg0: i32) -> (i32, i32) {
    %c0_i32 = arith.constant 0 : i32
    %c0_i32_0 = arith.constant 0 : i32
    %c0_i32_1 = arith.constant 0 : i32
    return %c0_i32, %c0_i32_0 : i32, i32
  }
}

</mosaic_0001>

<bundles_post_ra>
// kernel: _ann_forward.1
= control target key start
LH: loop header
LB: loop body
LE: loop exit
PB: predicated region body
PF: predicated region fallthrough
CT: control target
= control target key end

     0   :  { %10 = vsyncpa [#allocation4], 0  ;;  %s286_s0 = inlined_call_operand.vmem [shape: f32[3], index: 0, kind: input, shape index: {}]   ;;  %s287_s1 = inlined_call_operand.vmem [shape: f32[4,512], index: 1, kind: input, shape index: {}]   ;;  %s288_s2 = inlined_call_operand.vmem [shape: f32[4,512], index: 2, kind: output, shape index: {0}]   ;;  %s289_s3 = inlined_call_operand.hbm [shape: f32[1,1], index: 3, kind: output, shape index: {1}]   ;;  %s290_s4 = inlined_call_operand.hbm [shape: f32[1,1], index: 4, kind: output, shape index: {2}]  }
   0x1   :  { %11 = vsyncpa [#allocation3], 0 }
   0x2   :  { %12 = vsyncpa [#allocation7], 0  ;;  %s19_s17 = sshll.u32 %s286_s0, 4  ;;  %s20_s17 = int_to_ptr.vmem [resolvable:$true] %s19_s17 }
   0x3   :  { %s147_s18 = scalar_lea.vmem %s20_s17, 16  ;;  %p152_p1 = scmp.lt.s32.totalorder %s20_s17, %s20_s17 }
   0x4   :  { %p148_p0 = scmp.ne.s32.totalorder %s20_s17, %s147_s18  ;;  %p153_p2 = scmp.lt.s32.totalorder %s147_s18, %s147_s18 }
   0x6   :  { %p154_p3 = por %p153_p2, %p152_p1 }
   0x8   :  { %p155_p4 = pnand %p154_p3, %p148_p0 }
   0xa   :  { %158 = shalt.err (!%p155_p4)
}
   0xb   :  { %s209_s19 = smov [#allocation2]  }
   0xc   :  { %22 = dma.vmem_to_smem %s20_s17, 16, %s209_s19, [#allocation4]  }
   0xd   :  { %203 = dma.done.wait [#allocation4], 16  }
   0xe   :  { %204 = vsyncadd [#allocation4], 4294967280 }
   0xf   :  { %28 = sfence }
  0x10   :  { %s29_s20 = sld [smem:[#allocation2]]  ;;  %v32_v0 = vld [vmem:[%s287_s1] sm:$0xff]  ;;  %v33_v1 = vld [vmem:[%s287_s1 + $0x8] sm:$0xff]  ;;  %vm45_vm0 = vcmask 1043456   ;;  %s138_s1 = sld [smem:[#allocation2 + $0x1]]  ;;  %vm77_vm1 = vcmask 0  }
  0x11   :  { %s139_s24 = sld [smem:[#allocation2 + $0x2]]  ;;  %v70_v27 = vmax.f32 %v33_v1, 0.0  ;;  %v69_v29 = vmax.f32 %v32_v0, 0.0  ;;  %s210_s5 = smov [#allocation5]  }
  0x16   :  { %v34_v2 = vstv %s29_s20  ;;  %s63_s25 = smul.f32 2.0, %s138_s1 }
  0x17   :  { %v35_v3 = vsub.f32 %v32_v0, %v34_v2  ;;  %v36_v4 = vsub.f32 %v33_v1, %v34_v2  ;;  %v64_v23 = vstv %s139_s24 }
  0x18   :  { %v66_v25 = vstv %s63_s25 }
  0x19   :  { %v37_v5 = vmax.f32 %v35_v3, 0.0  ;;  %v38_v6 = vmax.f32 %v36_v4, 0.0 }
  0x1b   :  { %v41_v7 = vcombine.high %v37_v5, %v37_v5  ;;  %v42_v8 = vcombine.high %v38_v6, %v38_v6  ;;  %v46_v9 = vsel %vm45_vm0, %v37_v5, 0.0  ;;  %v49_v11 = vsel %vm45_vm0, %v38_v6, 0.0 }
  0x1d   :  { %v47_v10 = vsel %vm45_vm0, %v41_v7, 0.0  ;;  %v51_v13 = vsel %vm45_vm0, %v42_v8, 0.0 }
  0x1e   :  { %v48_v12 = vadd.f32 %v47_v10, %v46_v9 }
  0x20   :  { %v50_v14 = vadd.f32 %v49_v11, %v48_v12 }
  0x22   :  { %v52_v15 = vadd.f32 %v51_v13, %v50_v14 }
  0x24   :  { %53 = vadd.xlane.f32.xlu0 %v52_v15 }
  0xb1   :  { %v54_v16 = vpop.xlane.xlu0 %53 }
  0xb2   :  { %v55_v17 = vrot.slane %v54_v16, 4 }
  0xb4   :  { %v56_v18 = vadd.f32 %v55_v17, %v54_v16 }
  0xb6   :  { %v57_v19 = vrot.slane %v56_v18, 2 }
  0xb8   :  { %v58_v20 = vadd.f32 %v57_v19, %v56_v18 }
  0xba   :  { %v59_v21 = vrot.slane %v58_v20, 1 }
  0xbc   :  { %v60_v22 = vadd.f32 %v59_v21, %v58_v20 }
  0xbe   :  { %140 = vpush %v60_v22 }
  0xef   :  { %s141_s26 = spop %140 }
  0xf0   :  { %v62_v24 = vstv %s141_s26 }
  0xf1   :  { %v65_v26 = vmul.f32 %v64_v23, %v62_v24 }
  0xf3   :  { %v67_v28 = vmul.f32 %v66_v25, %v65_v26 }
  0xf5   :  { %v68_v30 = vadd.f32 %v67_v28, %v34_v2 }
  0xf7   :  { %v71_v31 = vmin.f32 %v69_v29, %v68_v30  ;;  %v72_v32 = vmin.f32 %v70_v27, %v68_v30  ;;  %78 = vst.msk [vmem:[#allocation5] sm:$0x1] %vm77_vm1, %v68_v30 }
  0xf9   :  { %73 = vst [vmem:[%s288_s2] sm:$0xff] %v71_v31  ;;  %74 = vst [vmem:[%s288_s2 + $0x8] sm:$0xff] %v72_v32  ;;  %v75_v33 = vsub.f32 %v71_v31, %v32_v0  ;;  %v76_v34 = vsub.f32 %v72_v32, %v33_v1  ;;  %s113_s2 = sshll.u32 %s210_s5, 4  ;;  %s114_s2 = int_to_ptr.vmem [resolvable:$true] %s113_s2 }
  0xfa   :  { %s159_s6 = scalar_lea.vmem %s114_s2, 16  ;;  %s163_s7 = scalar_lea.vmem %s114_s2, 32 }
  0xfb   :  { %v79_v35 = vmul.f32 %v75_v33, %v75_v33  ;;  %v80_v36 = vmul.f32 %v76_v34, %v76_v34  ;;  %p160_p5 = scmp.ne.s32.totalorder %s114_s2, %s159_s6  ;;  %p164_p6 = scmp.lt.s32.totalorder %s114_s2, %s114_s2 }
  0xfc   :  { %p165_p7 = scmp.lt.s32.totalorder %s163_s7, %s159_s6 }
  0xfd   :  { %v83_v37 = vcombine.high %v79_v35, %v79_v35  ;;  %v84_v38 = vcombine.high %v80_v36, %v80_v36  ;;  %v87_v39 = vsel %vm45_vm0, %v79_v35, 0.0  ;;  %v90_v42 = vsel %vm45_vm0, %v80_v36, 0.0 }
  0xfe   :  { %p166_p8 = por %p165_p7, %p164_p6 }
  0xff   :  { %v88_v40 = vsel %vm45_vm0, %v83_v37, 0.0  ;;  %v92_v44 = vsel %vm45_vm0, %v84_v38, 0.0 }
 0x100   :  { %v89_v41 = vadd.f32 %v88_v40, %v87_v39  ;;  %p167_p9 = pnand %p166_p8, %p160_p5 }
 0x102   :  { %v91_v43 = vadd.f32 %v90_v42, %v89_v41 }
 0x104   :  { %v93_v45 = vadd.f32 %v92_v44, %v91_v43 }
 0x106   :  { %94 = vadd.xlane.f32.xlu0 %v93_v45 }
 0x107   :  { %170 = shalt.err (!%p167_p9)
}
 0x108   :  { %s171_s10 = scalar_lea.hbm %s289_s3, 16 }
 0x109   :  { %p172_p10 = scmp.ne.s32.totalorder %s289_s3, %s171_s10  ;;  %p175_p11 = scmp.lt.u32.totalorder %s171_s10, %s289_s3 }
 0x10b   :  { %p177_p12 = pnand %p175_p11, %p172_p10 }
 0x10d   :  { %180 = shalt.err (!%p177_p12)
}
 0x10e   :  { %116 = dma.vmem_to_hbm [thread:$0]  %s114_s2, 16, %s289_s3, [#allocation3]  }
 0x10f   :  { %s211_s17 = smov [#allocation6]  }
 0x110   :  { %s123_s18 = sshll.u32 %s211_s17, 4  ;;  %s124_s18 = int_to_ptr.vmem [resolvable:$true] %s123_s18 }
 0x111   :  { %s181_s20 = scalar_lea.vmem %s124_s18, 16  ;;  %s185_s21 = scalar_lea.vmem %s124_s18, 32 }
 0x112   :  { %p182_p13 = scmp.ne.s32.totalorder %s124_s18, %s181_s20  ;;  %p186_p0 = scmp.lt.s32.totalorder %s124_s18, %s124_s18 }
 0x113   :  { %p187_p1 = scmp.lt.s32.totalorder %s185_s21, %s181_s20 }
 0x115   :  { %p188_p2 = por %p187_p1, %p186_p0 }
 0x117   :  { %p189_p3 = pnand %p188_p2, %p182_p13 }
 0x193   :  { %v95_v46 = vpop.xlane.xlu0 %94 }
 0x194   :  { %v96_v47 = vrot.slane %v95_v46, 4 }
 0x196   :  { %v97_v48 = vadd.f32 %v96_v47, %v95_v46 }
 0x198   :  { %v98_v49 = vrot.slane %v97_v48, 2 }
 0x19a   :  { %v99_v50 = vadd.f32 %v98_v49, %v97_v48 }
 0x19c   :  { %v100_v51 = vrot.slane %v99_v50, 1 }
 0x19e   :  { %v101_v52 = vadd.f32 %v100_v51, %v99_v50 }
 0x1a0   :  { %142 = vpush %v101_v52 }
 0x1d1   :  { %s143_s19 = spop %142 }
 0x1d2   :  { %v103_v53 = vstv %s143_s19 }
 0x1d3   :  { %104 = vst.msk [vmem:[#allocation6] sm:$0x1] %vm77_vm1, %v103_v53 }
 0x1d4   :  { %192 = shalt.err (!%p189_p3)
}
 0x1d5   :  { %s193_s23 = scalar_lea.hbm %s290_s4, 16 }
 0x1d6   :  { %p194_p4 = scmp.ne.s32.totalorder %s290_s4, %s193_s23  ;;  %p197_p5 = scmp.lt.u32.totalorder %s193_s23, %s290_s4 }
 0x1d8   :  { %p199_p6 = pnand %p197_p5, %p194_p4 }
 0x1da   :  { %202 = shalt.err (!%p199_p6)
}
 0x1db   :  { %126 = dma.vmem_to_hbm [thread:$0]  %s124_s18, 16, %s290_s4, [#allocation7]  }
 0x1dc   :  { %205 = dma.done.wait [#allocation3], 16  }
 0x1dd   :  { %206 = vsyncadd [#allocation3], 4294967280 }
 0x1de   :  { %207 = dma.done.wait [#allocation7], 16  }
 0x1df   :  { %208 = vsyncadd [#allocation7], 4294967280 }
 0x1e0   :  { %135 = vsyncpa [#allocation3], 1 }
 0x1e1   :  { %136 = vsyncpa [#allocation7], 1 }
 0x1e2   :  { %137 = vsyncpa [#allocation4], 1 }

</bundles_post_ra>
